<compile_context>
chip_gen: v7x
topology: tpu7x:2x2x1
jax: 0.10.0
libtpu: 0.0.40
codegen_flags: <defaults>
</compile_context>

<pallas_src>
import functools

import jax
import jax.numpy as jnp
from jax.experimental import pallas as pl
from jax.experimental.pallas import tpu as pltpu


def _layernorm2d_kernel(x_ref, w_ref, b_ref, o_ref, *, eps, inv_c):
    # x_ref: (bn, C, T) block — channels on the sublane axis, lane-dense
    # spatial tile on the lane axis.
    x = x_ref[...].astype(jnp.float32)
    # Single traversal of x for both reductions (sum and sum of squares).
    mu = jnp.sum(x, axis=1, keepdims=True) * inv_c          # (bn, 1, T)
    ex2 = jnp.sum(x * x, axis=1, keepdims=True) * inv_c     # (bn, 1, T)
    var = jnp.maximum(ex2 - mu * mu, 0.0)                   # biased var over C
    inv = jax.lax.rsqrt(var + eps)                          # EUP transcendental
    w = w_ref[...].astype(jnp.float32)                      # (1, C, 1) lane-bcast
    b = b_ref[...].astype(jnp.float32)                      # (1, C, 1)
    # Recompute (x - mu) here instead of holding a centered full-size temp.
    o_ref[...] = ((x - mu) * inv * w + b).astype(o_ref.dtype)


def _vmem_limit_bytes():
    """Generation-aware scoped-VMEM limit."""
    try:
        cap = int(pltpu.get_tpu_info().vmem_capacity_bytes)
    except Exception:  # pragma: no cover - e.g. interpret mode / no TPU info
        cap = 128 * 1024 * 1024
    # ~3/4 of physical, capped at 64 MiB: 64 MiB on v5e/v6e (128 MiB phys),
    # 48 MiB on v7x (64 MiB phys).
    return min(64 * 1024 * 1024, (cap * 3) // 4)


def _pick_tiling(N, C, HW, itemsize, tile_budget):
    """Choose (bn, tile_hw, hw_padded) for blocks of shape (bn, C, tile_hw)."""
    lanes = 128
    m = -(-HW // lanes)                       # spatial extent in 128-lane groups
    # Sublane packing of the C axis (8 for f32, 16 for bf16, 32 for int8):
    # padded channels still occupy VMEM/vregs, so budget against c_pad.
    pack = max(8, 32 // itemsize)
    c_pad = -(-C // pack) * pack
    # Per spatial column of one block-row: 2x input + 2x output double-buffered
    # blocks (input dtype) plus ~4 full-size f32 temporaries in the kernel.
    bytes_per_col = c_pad * (4 * itemsize + 4 * 4)

    d_max = max(1, min(m, tile_budget // (bytes_per_col * lanes)))
    # Enough grid steps to feed both TensorCores on v7x (megacore sharding).
    min_steps = min(8, N * m)

    best = None
    for d in range(d_max, 0, -1):
        spatial_steps = -(-m // d)
        if N * spatial_steps < min_steps:
            continue                           # too few steps for 2 TCs
        pad = spatial_steps * d - m            # wasted 128-lane groups
        key = (pad, -d)                        # minimize padding, then maximize tile
        if best is None or key < best[0]:
            best = (key, d, spatial_steps)
    _, d, spatial_steps = best
    tile_hw = d * lanes
    hw_padded = spatial_steps * tile_hw

    # Small spatial extents: batch rows along N into one block so DMAs stay
    # large, as long as budget and the megacore step count allow it.
    bn = 1
    if spatial_steps == 1:
        while (2 * bn <= N and N % (2 * bn) == 0
               and bn * c_pad * tile_hw * itemsize < (1 << 20)
               and 2 * bn * bytes_per_col * tile_hw <= tile_budget
               and N // (2 * bn) >= min_steps):
            bn *= 2
    return bn, tile_hw, hw_padded


def layernorm2d(x, weight, bias, eps=1e-6):
    """x: (N, C, H, W); weight, bias: (C,). Returns (N, C, H, W).

    Note: C rides on the sublane axis; C that is a multiple of 8 (f32) / 16
    (bf16) uses vregs and VMEM fully. Smaller C is correct but padded.
    """
    N, C, H, W = x.shape
    HW = H * W
    itemsize = jnp.dtype(x.dtype).itemsize

    vmem_limit = _vmem_limit_bytes()
    tile_budget = (vmem_limit * 3) // 4        # headroom for params/scratch
    bn, tile_hw, HWp = _pick_tiling(N, C, HW, itemsize, tile_budget)

    x3 = x.reshape(N, C, HW)                   # free reshape: H,W contiguous
    if HWp != HW:
        # Pad so every block is full -> unmasked, lane-dense vld/vst.
        x3 = jnp.pad(x3, ((0, 0), (0, 0), (0, HWp - HW)))
    w3 = weight.reshape(1, C, 1)
    b3 = bias.reshape(1, C, 1)

    grid = (pl.cdiv(N, bn), HWp // tile_hw)
    kernel = functools.partial(_layernorm2d_kernel, eps=eps, inv_c=1.0 / C)

    out3 = pl.pallas_call(
        kernel,
        out_shape=jax.ShapeDtypeStruct((N, C, HWp), x.dtype),
        grid_spec=pltpu.PrefetchScalarGridSpec(
            num_scalar_prefetch=0,
            grid=grid,
            in_specs=[
                # Optional sweep: pipeline_mode=pl.Buffered(3) here if xprof
                # shows exposed DMA gaps at step boundaries; default is fine.
                pl.BlockSpec((bn, C, tile_hw), lambda n, s: (n, 0, s)),
                pl.BlockSpec((1, C, 1), lambda n, s: (0, 0, 0)),  # resident
                pl.BlockSpec((1, C, 1), lambda n, s: (0, 0, 0)),  # resident
            ],
            out_specs=pl.BlockSpec((bn, C, tile_hw), lambda n, s: (n, 0, s)),
        ),
        compiler_params=pltpu.CompilerParams(
            dimension_semantics=("parallel", "parallel"),
            vmem_limit_bytes=vmem_limit,
        ),
    )(x3, w3, b3)

    if HWp != HW:
        out3 = out3[:, :, :HW]
    return out3.reshape(N, C, H, W)


def layernorm2d_ref(x, weight, bias, eps=1e-6):
    """Pure-JAX reference matching the PyTorch forward (two-pass variance)."""
    xf = x.astype(jnp.float32)
    mu = jnp.mean(xf, axis=1, keepdims=True)
    var = jnp.mean((xf - mu) ** 2, axis=1, keepdims=True)
    y = (xf - mu) / jnp.sqrt(var + eps)
    C = x.shape[1]
    return (weight.reshape(1, C, 1, 1) * y + bias.reshape(1, C, 1, 1)).astype(x.dtype)


if __name__ == "__main__":
    key = jax.random.PRNGKey(0)
    N, C, H, W = 2, 4, 16, 16
    x = jax.random.normal(key, (N, C, H, W), dtype=jnp.float32)

    # Deterministic parameter init matching nn.Parameter(torch.ones/zeros(channels))
    weight = jnp.ones((C,), dtype=jnp.float32)
    bias = jnp.zeros((C,), dtype=jnp.float32)

    out = layernorm2d(x, weight, bias, eps=1e-6)
    out = jax.block_until_ready(out)

    ref = layernorm2d_ref(x, weight, bias, eps=1e-6)
    assert out.shape == (N, C, H, W)
    # Tolerance: kernel uses single-pass var = E[x^2] - mu^2 (fp32); rounding
    # differs slightly from the two-pass reference for low-variance columns.
    assert jnp.allclose(out, ref, atol=1e-4, rtol=1e-4), "mismatch vs reference"

    print("KERNEL_OK")
</pallas_src>

<mosaic_0001>
module attributes {stable_mosaic.version = 11 : i64} {
  func.func @_layernorm2d_kernel(%arg0: i32, %arg1: i32, %arg2: memref<1x4x128xf32, #tpu.memory_space<vmem>>, %arg3: memref<1x4x1xf32, #tpu.memory_space<vmem>>, %arg4: memref<1x4x1xf32, #tpu.memory_space<vmem>>, %arg5: memref<1x4x128xf32, #tpu.memory_space<vmem>>) attributes {dimension_semantics = [#tpu.dimension_semantics<parallel>, #tpu.dimension_semantics<parallel>], iteration_bounds = array<i64: 2, 2>, scalar_prefetch = 0 : i64, scratch_operands = 0 : i64, tpu.core_type = #tpu.core_type<tc>, window_params = [{transform_indices = @transform_0, window_bounds = array<i64: 1, 4, 128>}, {pipeline_mode = #tpu.pipeline_mode<synchronous>, transform_indices = @transform_1, window_bounds = array<i64: 1, 4, 1>}, {pipeline_mode = #tpu.pipeline_mode<synchronous>, transform_indices = @transform_2, window_bounds = array<i64: 1, 4, 1>}, {transform_indices = @transform_3, window_bounds = array<i64: 1, 4, 128>}]} {
    %c0 = arith.constant 0 : index
    %c0_0 = arith.constant 0 : index
    %c0_1 = arith.constant 0 : index
    %0 = vector.load %arg2[%c0, %c0_0, %c0_1] : memref<1x4x128xf32, #tpu.memory_space<vmem>>, vector<1x4x128xf32>
    %cst = arith.constant dense<0.000000e+00> : vector<1x128xf32>
    %1 = vector.multi_reduction <add>, %0, %cst [1] : vector<1x4x128xf32> to vector<1x128xf32>
    %2 = vector.shape_cast %1 : vector<1x128xf32> to vector<1x1x128xf32>
    %cst_2 = arith.constant 2.500000e-01 : f32
    %3 = vector.broadcast %cst_2 : f32 to vector<1x1x128xf32>
    %4 = arith.mulf %2, %3 : vector<1x1x128xf32>
    %5 = arith.mulf %0, %0 : vector<1x4x128xf32>
    %cst_3 = arith.constant dense<0.000000e+00> : vector<1x128xf32>
    %6 = vector.multi_reduction <add>, %5, %cst_3 [1] : vector<1x4x128xf32> to vector<1x128xf32>
    %7 = vector.shape_cast %6 : vector<1x128xf32> to vector<1x1x128xf32>
    %cst_4 = arith.constant 2.500000e-01 : f32
    %8 = vector.broadcast %cst_4 : f32 to vector<1x1x128xf32>
    %9 = arith.mulf %7, %8 : vector<1x1x128xf32>
    %10 = arith.mulf %4, %4 : vector<1x1x128xf32>
    %11 = arith.subf %9, %10 : vector<1x1x128xf32>
    %cst_5 = arith.constant 0.000000e+00 : f32
    %12 = vector.broadcast %cst_5 : f32 to vector<1x1x128xf32>
    %13 = arith.maximumf %11, %12 : vector<1x1x128xf32>
    %cst_6 = arith.constant 9.99999997E-7 : f32
    %14 = vector.broadcast %cst_6 : f32 to vector<1x1x128xf32>
    %15 = arith.addf %13, %14 : vector<1x1x128xf32>
    %16 = math.rsqrt %15 : vector<1x1x128xf32>
    %c0_7 = arith.constant 0 : index
    %c0_8 = arith.constant 0 : index
    %c0_9 = arith.constant 0 : index
    %17 = vector.load %arg3[%c0_7, %c0_8, %c0_9] : memref<1x4x1xf32, #tpu.memory_space<vmem>>, vector<1x4x1xf32>
    %c0_10 = arith.constant 0 : index
    %c0_11 = arith.constant 0 : index
    %c0_12 = arith.constant 0 : index
    %18 = vector.load %arg4[%c0_10, %c0_11, %c0_12] : memref<1x4x1xf32, #tpu.memory_space<vmem>>, vector<1x4x1xf32>
    %19 = vector.broadcast %4 : vector<1x1x128xf32> to vector<1x4x128xf32>
    %20 = arith.subf %0, %19 : vector<1x4x128xf32>
    %21 = vector.broadcast %16 : vector<1x1x128xf32> to vector<1x4x128xf32>
    %22 = arith.mulf %20, %21 : vector<1x4x128xf32>
    %23 = vector.broadcast %17 : vector<1x4x1xf32> to vector<1x4x128xf32>
    %24 = arith.mulf %22, %23 : vector<1x4x128xf32>
    %25 = vector.broadcast %18 : vector<1x4x1xf32> to vector<1x4x128xf32>
    %26 = arith.addf %24, %25 : vector<1x4x128xf32>
    %c0_13 = arith.constant 0 : index
    %c0_14 = arith.constant 0 : index
    %c0_15 = arith.constant 0 : index
    %27 = vector.load %arg5[%c0_13, %c0_14, %c0_15] : memref<1x4x128xf32, #tpu.memory_space<vmem>>, vector<1x4x128xf32>
    tpu.vector_store %arg5[%c0_13, %c0_14, %c0_15], %26 {strides = array<i32>} : memref<1x4x128xf32, #tpu.memory_space<vmem>>, vector<1x4x128xf32>,
    return
  }
  func.func @transform_0(%arg0: i32, %arg1: i32) -> (i32, i32, i32) {
    %c0_i32 = arith.constant 0 : i32
    %c0_i32_0 = arith.constant 0 : i32
    return %arg0, %c0_i32, %arg1 : i32, i32, i32
  }
  func.func @transform_1(%arg0: i32, %arg1: i32) -> (i32, i32, i32) {
    %c0_i32 = arith.constant 0 : i32
    %c0_i32_0 = arith.constant 0 : i32
    %c0_i32_1 = arith.constant 0 : i32
    %c0_i32_2 = arith.constant 0 : i32
    return %c0_i32, %c0_i32_0, %c0_i32_1 : i32, i32, i32
  }
  func.func @transform_2(%arg0: i32, %arg1: i32) -> (i32, i32, i32) {
    %c0_i32 = arith.constant 0 : i32
    %c0_i32_0 = arith.constant 0 : i32
    %c0_i32_1 = arith.constant 0 : i32
    %c0_i32_2 = arith.constant 0 : i32
    return %c0_i32, %c0_i32_0, %c0_i32_1 : i32, i32, i32
  }
  func.func @transform_3(%arg0: i32, %arg1: i32) -> (i32, i32, i32) {
    %c0_i32 = arith.constant 0 : i32
    %c0_i32_0 = arith.constant 0 : i32
    return %arg0, %c0_i32, %arg1 : i32, i32, i32
  }
}

</mosaic_0001>

<bundles_post_ra>
// kernel: tpu_custom_call.1
= control target key start
LH: loop header
LB: loop body
LE: loop exit
PB: predicated region body
PF: predicated region fallthrough
CT: control target
= control target key end

     0   :  { %s1000_s0 = inlined_call_operand.hbm [shape: f32[2,4,256], index: 0, kind: input, shape index: {}]   ;;  %s1001_s1 = inlined_call_operand.hbm [shape: f32[1,4,1], index: 1, kind: input, shape index: {}]   ;;  %s1002_s2 = inlined_call_operand.hbm [shape: f32[1,4,1], index: 2, kind: input, shape index: {}]   ;;  %s1003_s3 = inlined_call_operand.hbm [shape: f32[2,4,256], index: 3, kind: output, shape index: {}]  }
   0x1   :  { %1010 = sst [smem:[#allocation14_spill]] %s1001_s1 }
   0x2   :  { %1011 = sst [smem:[#allocation15_spill]] %s1002_s2 }
   0x3   :  { %8 = vsyncpa [#allocation3], 0 }
   0x4   :  { %10 = vsyncpa [#allocation3 + $0x1], 0 }
   0x5   :  { %11 = vsyncpa [#allocation6], 0 }
   0x6   :  { %12 = vsyncpa [#allocation4], 0 }
   0x7   :  { %14 = vsyncpa [#allocation4 + $0x1], 0  ;;  %s727_s12 = smov 0   ;;  %s729_s13 = smov 0  }
   0x8   :  { %s731_s14 = smov 0   ;;  %s733_s15 = smov 0  }
   0x9   :  { %s735_s16 = smov 0   ;;  %s737_s17 = smov 0  }
   0xa   :  { %s739_s18 = smov 0   ;;  %s741_s19 = smov 0  }
   0xb LB: > { %s390_s20 = sadd.s32 4294967295, %s700_s19   ;;  %s391_s21 = sadd.s32 4294967294, %s700_s19   ;;  %s700_s19 = sphi %s741_s19, %s20_s19   ;;  %s696_s18 = sphi %s739_s18, %s1036_s18   ;;  %s692_s17 = sphi %s737_s17, %s1035_s17   ;;  %s688_s16 = sphi %s735_s16, %s1034_s16   ;;  %s684_s15 = sphi %s733_s15, %s1033_s15   ;;  %s680_s14 = sphi %s731_s14, %s1032_s14   ;;  %s676_s13 = sphi %s729_s13, %s1031_s13   ;;  %s672_s12 = sphi %s727_s12, %s1030_s12  }
   0xc   : > { %p54_p0 = scmp.ne.s32.totalorder %s676_s13, %s672_s12  ;;  %p773_p1 = scmp.eq.s32.totalorder %s390_s20, 0 }
   0xd   : > { %p128_p2 = scmp.eq.s32.totalorder %s391_s21, 3  ;;  %p392_p4 = scmp.ge.s32.totalorder %s700_s19, 1 }
   0xe   : > { %s1012_s22 = scalar_select %p773_p1, 1, 0 }
   0xf   : > { %p779_p3 = por %p773_p1, %p54_p0  ;;  %p784_p5 = por %p128_p2, %p54_p0 }
  0x10   : > { %p135_p6 = scmp.lt.s32.totalorder %s700_s19, 5  ;;  %s702_s26 = smov [#allocation5]  }
  0x11   : > { %s1013_s23 = scalar_select %p779_p3, 1, 0 }
  0x12   : > { %s1014_s24 = scalar_select %p784_p5, 1, 0 }
  0x13   : > { %p789_p7 = pnand %p392_p4, %p135_p6  ;;  %s148_s27 = sshll.u32 %s702_s26, 4  ;;  %s149_s27 = int_to_ptr.vmem [resolvable:$true] %s148_s27 }
  0x14   : > { %1015 = sst [smem:[#allocation12_spill]] %s1014_s24  ;;  %s703_s28 = smov [#allocation7]  }
  0x15   : > { %s1016_s25 = scalar_select %p789_p7, 1, 0 }
  0x16   : > { %p421_p8 = pneg %p789_p7  ;;  %s159_s29 = sshll.u32 %s703_s28, 4  ;;  %s801_s29 = int_to_ptr.vmem [resolvable:$true] %s159_s29 }
  0x17   : > { %s1018_s1 = sld [smem:[#allocation14_spill]] }
  0x18   : > { %p797_p9 = pnand %p421_p8, %p773_p1 }
  0x1a   : > { %p514_p11 = pneg %p797_p9 }
  0x1d   : > { %s512_s6 = scalar_lea.hbm %s1018_s1, 64 }
  0x1e   : > { %p513_p10 = scmp.ne.s32.totalorder %s1018_s1, %s512_s6  ;;  %p519_p0 = scmp.lt.u32.totalorder %s512_s6, %s1018_s1 }
  0x20   : > { %p515_p12 = pnand %p514_p11, %p513_p10 }
  0x22   : > { %p516_p13 = pneg %p515_p12 }
  0x24   : > { %p521_p2 = pnand %p519_p0, %p516_p13 }
  0x26   : > { %524 = shalt.err (!%p521_p2)
}
  0x27   : > { %s525_s11 = scalar_lea.vmem %s149_s27, 64  ;;  %p533_p5 = scmp.lt.s32.totalorder %s149_s27, %s149_s27 }
  0x28   : > { %p526_p4 = scmp.ne.s32.totalorder %s149_s27, %s525_s11  ;;  %p534_p1 = scmp.lt.s32.totalorder %s525_s11, %s525_s11 }
  0x2a   : > { %p528_p6 = pnand %p526_p4, %p514_p11  ;;  %p535_p3 = por %p534_p1, %p533_p5 }
  0x2c   : > { %p529_p8 = pneg %p528_p6 }
  0x2e   : > { %p536_p7 = pnand %p535_p3, %p529_p8 }
  0x30   : > { %539 = shalt.err (!%p536_p7)
}
  0x31   : > { %424 = dma.hbm_to_vmem [thread:$0]  (!%p797_p9), %s1018_s1, 64, %s149_s27, [#allocation6]  }
  0x32   : > { %s1019_s2 = sld [smem:[#allocation15_spill]] }
  0x38   : > { %s540_s5 = scalar_lea.hbm %s1019_s2, 64 }
  0x39   : > { %p541_p10 = scmp.ne.s32.totalorder %s1019_s2, %s540_s5  ;;  %p547_p5 = scmp.lt.u32.totalorder %s540_s5, %s1019_s2 }
  0x3b   : > { %p543_p1 = pnand %p541_p10, %p514_p11 }
  0x3d   : > { %p544_p3 = pneg %p543_p1 }
  0x3f   : > { %p549_p7 = pnand %p547_p5, %p544_p3 }
  0x41   : > { %552 = shalt.err (!%p549_p7)
}
  0x42   : > { %s553_s27 = scalar_lea.vmem %s801_s29, 64  ;;  %p561_p2 = scmp.lt.s32.totalorder %s801_s29, %s801_s29 }
  0x43   : > { %p554_p12 = scmp.ne.s32.totalorder %s801_s29, %s553_s27  ;;  %p562_p4 = scmp.lt.s32.totalorder %s553_s27, %s553_s27 }
  0x45   : > { %p556_p13 = pnand %p554_p12, %p514_p11  ;;  %p563_p6 = por %p562_p4, %p561_p2 }
  0x47   : > { %p557_p0 = pneg %p556_p13 }
  0x49   : > { %p564_p8 = pnand %p563_p6, %p557_p0 }
  0x4b   : > { %567 = shalt.err (!%p564_p8)
}
  0x4c   : > { %427 = dma.hbm_to_vmem [thread:$0]  (!%p797_p9), %s1019_s2, 64, %s801_s29, [#allocation6]  }
  0x4d   : > { %p122_p11 = scmp.eq.s32.totalorder %s390_s20, 3  ;;  %s29_s21 = sadd.s32 1, %s692_s17 }
  0x4e   : > { %p30_p10 = scmp.ge.s32.totalorder %s29_s21, 2  ;;  %s32_s30 = sadd.s32 1, %s696_s18 }
  0x4f   : > { %p48_p1 = scmp.ne.s32.totalorder %s680_s14, %s676_s13  ;;  %p49_p3 = scmp.eq.s32.totalorder %s700_s19, 0 }
  0x50   : > { %s1038_s21 = smov (%p30_p10, %s29_s21), 0  ;;  %s1040_s30 = smov (!%p30_p10, %s32_s30), %s696_s18 }
  0x51   : > { %1020 = sst [smem:[#allocation13_spill]] %s1038_s21  ;;  %s37_s26 = ssub.s32 %s692_s17, %s1038_s21 }
  0x52   : > { %s41_s28 = sadd.s32 1, %s680_s14  ;;  %p34_p5 = scmp.ge.s32.totalorder %s1040_s30, 2 }
  0x53   : > { %p863_p9 = por %p122_p11, %p48_p1  ;;  %p867_p7 = por %p49_p3, %p48_p1 }
  0x54   : > { %s170_s4 = sand.u32 1, %s680_s14   ;;  %s1042_s30 = smov (%p34_p5, %s1040_s30), 0 }
  0x55   : > { %p438_p12 = scmp.lt.s32.totalorder %s700_s19, 4  ;;  %s396_s5 = sshll.u32 %s170_s4, 2 }
  0x56   : > { %s36_s6 = ssub.s32 %s696_s18, %s1042_s30  ;;  %s397_s8 = sshll.u32 %s696_s18, 1 }
  0x57   : > { %s38_s7 = sor.u32 %s37_s26, %s36_s6  ;;  %s179_s9 = sadd.s32 %s692_s17, %s397_s8 }
  0x58   : > { %p39_p13 = scmp.eq.s32.totalorder %s38_s7, 0  ;;  %s398_s27 = sshll.u32 %s179_s9, 6 }
  0x59   : > { %s174_s10 = scalar_lea.vmem [#allocation2], %s396_s5  ;;  %s885_s24 = scalar_lea.hbm %s1000_s0, %s398_s27 }
  0x5a   : > { %s183_s11 = sshll.u32 %s174_s10, 4  ;;  %p893_p0 = pnand %p438_p12, %p867_p7  ;;  %s887_s11 = int_to_ptr.vmem [resolvable:$true] %s183_s11 }
  0x5b   : > { %s880_s1 = scalar_select %p39_p13, %s680_s14, %s41_s28  }
  0x5c   : > { %s171_s28 = scalar_lea.sflag [#allocation3], %s170_s4  ;;  %s568_s5 = scalar_lea.hbm %s885_s24, 64 }
  0x5d   : > { %p569_p2 = scmp.ne.s32.totalorder %s885_s24, %s568_s5  ;;  %p570_p4 = pneg %p893_p0 }
  0x5e   : > { %s573_s20 = scalar_lea.hbm %s1000_s0, 256  ;;  %p574_p11 = scmp.lt.u32.totalorder %s885_s24, %s1000_s0 }
  0x5f   : > { %p571_p6 = pnand %p570_p4, %p569_p2  ;;  %p575_p10 = scmp.lt.u32.totalorder %s573_s20, %s568_s5 }
  0x60   : > { %p577_p3 = scmp.lt.u32.totalorder %s568_s5, %s885_s24 }
  0x61   : > { %p572_p8 = pneg %p571_p6  ;;  %p576_p1 = por %p575_p10, %p574_p11 }
  0x63   : > { %p578_p5 = por %p577_p3, %p576_p1 }
  0x65   : > { %p579_p7 = pnand %p578_p5, %p572_p8 }
  0x67   : > { %582 = shalt.err (!%p579_p7)
}
  0x68   : > { %s583_s4 = scalar_lea.vmem %s887_s11, 64  ;;  %s704_s8 = smov [#allocation2]  }
  0x69   : > { %p584_p12 = scmp.ne.s32.totalorder %s887_s11, %s583_s4  ;;  %s588_s9 = sshll.u32 %s704_s8, 4  ;;  %s589_s9 = int_to_ptr.vmem [resolvable:$false] %s588_s9 }
  0x6a   : > { %s590_s27 = scalar_lea.vmem %s589_s9, 128  ;;  %p591_p6 = scmp.lt.s32.totalorder %s887_s11, %s589_s9 }
  0x6b   : > { %p586_p13 = pnand %p584_p12, %p570_p4  ;;  %p592_p11 = scmp.lt.s32.totalorder %s590_s27, %s583_s4 }
  0x6d   : > { %p587_p2 = pneg %p586_p13  ;;  %p593_p10 = por %p592_p11, %p591_p6 }
  0x6f   : > { %p594_p1 = pnand %p593_p10, %p587_p2 }
  0x71   : > { %597 = shalt.err (!%p594_p1)
}
  0x72   : > { %431 = dma.hbm_to_vmem [thread:$0]  (!%p893_p0), %s885_s24, 64, %s887_s11, %s171_s28  }
  0x73   : > { %p1024_p8 = scmp.ne.s32.totalorder %s1016_s25, 0 }
  0x74   : > { %s925_s10 = sand.u32 (!%p1024_p8), 1, %s676_s13   ;;  %p1025_p4 = scmp.ne.s32.totalorder (!%p1024_p8), %s1013_s23, 0 }
  0x75   : > { %192 = sbr.rel (%p1024_p8) target bundleno = 278 (0x116), region = 32  ;;  %s400_s5 = sshll.u32 (!%p1024_p8), %s925_s10, 2 }
  0x76   : > { %s195_s2 = scalar_lea.sflag (!%p1024_p8), [#allocation3], %s925_s10  ;;  %s198_s21 = scalar_lea.vmem (!%p1024_p8), [#allocation2], %s400_s5 }
  0x7c   : > { %659 = dma.done.wait (%p1025_p4), %s195_s2, 64  }
  0x7d   : > { %661 = vsyncadd (%p1025_p4), %s195_s2, 4294967232  ;;  %p1026_p0 = scmp.ne.s32.totalorder %s1012_s22, 0 }
  0x7f   : > { %663 = dma.done.wait (%p1026_p0), [#allocation6], 128  }
  0x80   : > { %665 = vsyncadd (%p1026_p0), [#allocation6], 4294967168  ;;  %v705_v0 = vmov 0   ;;  %v253_v1 = vld [vmem:[#allocation5] sm:$0xf]  ;;  %vm230_vm0 = vcmask 1043456  }
  0x81   : > { %509 = vset.pattern.permute.xlu0 %v705_v0  ;;  %v254_v2 = vld [vmem:[#allocation7] sm:$0xf]  ;;  %v229_v3 = vld [vmem:[%s198_s21] sm:$0xf]  ;;  %s405_s22 = sshll.u32 %s688_s16, 1  ;;  %s228_s25 = scalar_lea.vmem [#allocation8], %s400_s5 }
  0x82   : > { %259 = vperm.xlu0 %509, %v253_v1   ;;  %v231_v4 = vsel %vm230_vm0, %v229_v3, 0.0  ;;  %v239_v5 = vmul.f32 %v229_v3, %v229_v3  ;;  %s282_s23 = sadd.s32 %s684_s15, %s405_s22  ;;  %s286_s11 = sshll.u32 %s228_s25, 4  ;;  %s948_s11 = int_to_ptr.vmem [resolvable:$true] %s286_s11 }
  0x83   : > { %v232_v6 = vrot.slane %v231_v4, 4  ;;  %s406_s24 = sshll.u32 %s282_s23, 6  ;;  %s271_s15 = scalar_lea.sflag [#allocation4], %s925_s10 }
  0x84   : > { %v240_v7 = vsel %vm230_vm0, %v239_v5, 0.0  ;;  %s946_s20 = scalar_lea.hbm %s1003_s3, %s406_s24  ;;  %s598_s16 = scalar_lea.vmem %s948_s11, 64 }
  0x85   : > { %v233_v8 = vadd.f32 %v232_v6, %v231_v4  ;;  %v241_v9 = vrot.slane %v240_v7, 4  ;;  %p599_p3 = scmp.ne.s32.totalorder %s948_s11, %s598_s16  ;;  %s706_s6 = smov [#allocation8]  }
  0x86   : > { %265 = vperm.xlu0 %509, %v254_v2   ;;  %s602_s7 = sshll.u32 %s706_s6, 4  ;;  %s603_s7 = int_to_ptr.vmem [resolvable:$false] %s602_s7 }
  0x87   : > { %v234_v10 = vrot.slane %v233_v8, 2  ;;  %v242_v11 = vadd.f32 %v241_v9, %v240_v7  ;;  %p600_p5 = pnand %p599_p3, %p863_p9  ;;  %s604_s4 = scalar_lea.vmem %s603_s7, 128 }
  0x88   : > { %p605_p12 = scmp.lt.s32.totalorder %s948_s11, %s603_s7  ;;  %p606_p13 = scmp.lt.s32.totalorder %s604_s4, %s598_s16 }
  0x89   : > { %v235_v12 = vadd.f32 %v234_v10, %v233_v8  ;;  %v243_v13 = vrot.slane %v242_v11, 2  ;;  %p601_p7 = pneg %p600_p5 }
  0x8a   : > { %p607_p2 = por %p606_p13, %p605_p12 }
  0x8b   : > { %v236_v14 = vrot.slane %v235_v12, 1  ;;  %v244_v15 = vadd.f32 %v243_v13, %v242_v11 }
  0x8c   : > { %p608_p6 = pnand %p607_p2, %p601_p7 }
  0x8d   : > { %v237_v16 = vadd.f32 %v236_v14, %v235_v12  ;;  %v245_v17 = vrot.slane %v244_v15, 1 }
  0x8f   : > { %v238_v18 = vmul.f32 0.25, %v237_v16  ;;  %v246_v19 = vadd.f32 %v245_v17, %v244_v15 }
  0x91   : > { %v247_v20 = vmul.f32 0.25, %v246_v19  ;;  %v248_v21 = vmul.f32 %v238_v18, %v238_v18  ;;  %v255_v25 = vsub.f32 %v229_v3, %v238_v18 }
  0x93   : > { %v249_v22 = vsub.f32 %v247_v20, %v248_v21 }
  0x95   : > { %v250_v23 = vmax.f32 %v249_v22, 0.0 }
  0x97   : > { %v251_v24 = vadd.f32 1e-06, %v250_v23 }
  0x99   : > { %510 = vrsqrt.f32 %v251_v24 }
  0xa3   : > { %v511_v26 = vpop.eup %510 }
  0xa4   : > { %v256_v27 = vmul.f32 %v511_v26, %v255_v25 }
 0x101   : > { %v260_v28 = vpop.permute.xlu0 %259 }
 0x102   : > { %v262_v29 = vmul.f32 %v260_v28, %v256_v27 }
 0x105   : > { %v266_v30 = vpop.permute.xlu0 %265 }
 0x106   : > { %v268_v31 = vadd.f32 %v266_v30, %v262_v29 }
 0x108   : > { %269 = vst [vmem:[%s228_s25] sm:$0xf] %v268_v31 }
 0x109   : > { %611 = shalt.err (!%p608_p6)
}
 0x10a   : > { %s612_s8 = scalar_lea.hbm %s946_s20, 64  ;;  %s616_s10 = scalar_lea.hbm %s1003_s3, 256 }
 0x10b   : > { %p613_p11 = scmp.ne.s32.totalorder %s946_s20, %s612_s8  ;;  %p617_p8 = scmp.lt.u32.totalorder %s946_s20, %s1003_s3 }
 0x10c   : > { %p618_p4 = scmp.lt.u32.totalorder %s616_s10, %s612_s8  ;;  %p620_p3 = scmp.lt.u32.totalorder %s612_s8, %s946_s20 }
 0x10d   : > { %p614_p10 = pnand %p613_p11, %p863_p9 }
 0x10e   : > { %p619_p0 = por %p618_p4, %p617_p8 }
 0x10f   : > { %p615_p1 = pneg %p614_p10 }
 0x110   : > { %p621_p5 = por %p620_p3, %p619_p0 }
 0x112   : > { %p622_p7 = pnand %p621_p5, %p615_p1 }
 0x114   : > { %625 = shalt.err (!%p622_p7)
}
 0x115   : > { %419 = dma.vmem_to_hbm [thread:$0]  (%p863_p9), %s948_s11, 64, %s946_s20, %s271_s15  }
 0x116 PF: > { %s1027_s21 = sld [smem:[#allocation12_spill]]  ;;  %p441_p12 = scmp.ge.s32.totalorder %s700_s19, 2 }
 0x117   : > { %s298_s22 = sand.u32 1, %s672_s12  }
 0x118   : > { %s299_s23 = scalar_lea.sflag [#allocation4], %s298_s22 }
 0x11c   : > { %p1028_p13 = scmp.ne.s32.totalorder %s1027_s21, 0 }
 0x11e   : > { %p433_p2 = pnand %p441_p12, %p1028_p13 }
 0x120   : > { %667 = dma.done.wait (!%p433_p2), %s299_s23, 64  }
 0x121   : > { %669 = vsyncadd (!%p433_p2), %s299_s23, 4294967232  ;;  %s20_s19 = sadd.s32 1, %s700_s19   ;;  %s1029_s29 = sld [smem:[#allocation13_spill]] }
 0x122   : > { %p17_p6 = scmp.ge.s32.totalorder %s20_s19, 6   ;;  %s1030_s12 = smov %s676_s13 }
 0x123   : > { %s1031_s13 = smov %s680_s14  ;;  %s1032_s14 = smov %s880_s1 }
 0x124   : > { %s1033_s15 = smov %s692_s17  ;;  %s1034_s16 = smov %s696_s18 }
 0x125   : > { %s1036_s18 = smov %s1042_s30  ;;  %19 = sbr.rel (!%p17_p6) target bundleno = 11 (0xb), region = 85 }
 0x127   : > { %s1035_s17 = smov %s1029_s29 }
 0x12c   :  { %304 = vsyncpa [#allocation3], 1 }
 0x12d   :  { %306 = vsyncpa [#allocation3 + $0x1], 1 }
 0x12e   :  { %307 = vsyncpa [#allocation6], 1 }
 0x12f   :  { %308 = vsyncpa [#allocation4], 1 }
 0x130   :  { %310 = vsyncpa [#allocation4 + $0x1], 1 }

</bundles_post_ra>
